<compile_context>
chip_gen: v5e
topology: v5e:2x2
jax: 0.10.0
libtpu: 0.0.40
codegen_flags: <defaults>
</compile_context>

<pallas_src>
import functools

import jax
import jax.numpy as jnp
from jax.experimental import pallas as pl
from jax.experimental.pallas import tpu as pltpu

EPSILON = 1e-14


def _round_up(n: int, m: int) -> int:
    return (n + m - 1) // m * m


# ---------------------------------------------------------------------------
# One-time parameter packing (hoisted out of the forward path).
# Layout of the packed (n_rows, lane_width) f32 buffer:
#   rows [0 : d_in)                  = w1   (d_in, hidden)   zero-padded lanes
#   rows [w2_row : w2_row + hidden)  = w2   (hidden, d_out)  zero-padded lanes
#   row  [b_row]                     = b1   (hidden,)        zero-padded lanes
#   row  [b_row + 1]                 = b2   (d_out,)         zero-padded lanes
# with w2_row = round_up(d_in, 8), b_row = w2_row + round_up(hidden, 128),
# n_rows rounded up to a multiple of 8, lane_width a multiple of 128.
# Padded lanes/rows are zero, so they contribute nothing to the matmuls; padded
# output lanes evaluate to ELU(0)+1+eps ~= 1 and are sliced away in the wrapper.
# ---------------------------------------------------------------------------
def pack_f_cov_params(w1, b1, w2, b2):
    """w1: (d_in, hidden); b1: (hidden,); w2: (hidden, d_out); b2: (d_out,).

    Weights are stored (in_features, out_features), i.e. the transpose of
    torch.nn.Linear.weight. Returns a single lane-dense f32 buffer.
    """
    d_in, hidden = w1.shape
    d_out = w2.shape[1]
    h_pad = _round_up(hidden, 128)
    n_pad = _round_up(d_out, 128)
    lane_w = max(h_pad, n_pad)

    w2_row = _round_up(d_in, 8)
    b_row = w2_row + h_pad
    n_rows = _round_up(b_row + 2, 8)

    buf = jnp.zeros((n_rows, lane_w), jnp.float32)
    buf = buf.at[0:d_in, 0:hidden].set(w1.astype(jnp.float32))
    buf = buf.at[w2_row:w2_row + hidden, 0:d_out].set(w2.astype(jnp.float32))
    buf = buf.at[b_row, 0:hidden].set(b1.astype(jnp.float32))
    buf = buf.at[b_row + 1, 0:d_out].set(b2.astype(jnp.float32))
    return buf


# ---------------------------------------------------------------------------
# Kernel: layer1 -> ReLU -> layer2 -> ELU + 1 + eps, lane-dense (1, Np) output.
# ---------------------------------------------------------------------------
def f_cov_kernel(x_ref, p_ref, y_ref, *, d_in, w2_row, b_row, h_pad, n_pad):
    # Static sublane/lane slices of a VMEM ref are free views.
    w1 = p_ref[0:d_in, 0:h_pad]                       # (d_in, h_pad)
    w2 = p_ref[w2_row:w2_row + h_pad, 0:n_pad]        # (h_pad, n_pad)
    b1 = p_ref[b_row:b_row + 1, 0:h_pad]              # (1, h_pad)
    b2 = p_ref[b_row + 1:b_row + 2, 0:n_pad]          # (1, n_pad)

    # layer1 + ReLU (MXU matmul, f32 accumulate)
    h = jnp.dot(x_ref[...], w1, preferred_element_type=jnp.float32)
    h = jnp.maximum(h + b1, 0.0)

    # layer2
    z = jnp.dot(h, w2, preferred_element_type=jnp.float32) + b2

    # ELU(z) + 1 + eps  ==  z + (1 + eps)   for z > 0
    #                       exp(z) + eps    for z <= 0   (exp(z) = expm1(z) + 1 exactly)
    one_plus_eps = jnp.float32(1.0 + EPSILON)
    eps = jnp.float32(EPSILON)
    y_ref[...] = jnp.where(z > 0.0, z + one_plus_eps, jnp.exp(z) + eps)


# ---------------------------------------------------------------------------
# Per-call forward: one pallas_call (2 input DMAs, 1 lane-dense output store)
# followed by jnp.diag of the valid slice.
# ---------------------------------------------------------------------------
@functools.partial(jax.jit, static_argnames=("d_in", "hidden", "d_out"))
def f_cov_forward(x, packed_params, *, d_in, hidden, d_out):
    """x: (1, d_in); packed_params from pack_f_cov_params. Returns (d_out, d_out)."""
    h_pad = _round_up(hidden, 128)
    n_pad = _round_up(d_out, 128)
    w2_row = _round_up(d_in, 8)
    b_row = w2_row + h_pad

    kernel = functools.partial(
        f_cov_kernel, d_in=d_in, w2_row=w2_row, b_row=b_row,
        h_pad=h_pad, n_pad=n_pad)

    cost = pl.CostEstimate(
        flops=2 * (d_in * h_pad + h_pad * n_pad),
        transcendentals=n_pad,
        bytes_accessed=4 * (packed_params.size + x.size + n_pad),
    )

    vmem = pl.BlockSpec(memory_space=pltpu.MemorySpace.VMEM)
    y = pl.pallas_call(
        kernel,
        out_shape=jax.ShapeDtypeStruct((1, n_pad), jnp.float32),
        in_specs=[vmem, vmem],
        out_specs=vmem,
        cost_estimate=cost,
    )(x.astype(jnp.float32), packed_params)

    # torch.diag(x.squeeze()): diagonal expansion stays outside the kernel (cheap in
    # XLA, keeps the in-kernel store lane-dense; padded lanes beyond d_out are never read).
    return jnp.diag(y[0, :d_out])


def reference_forward(x, w1, b1, w2, b2):
    # Mirrors the PyTorch module (ELU via expm1, then += 1 + eps).
    h = jnp.maximum(x @ w1 + b1[None, :], 0.0)
    z = h @ w2 + b2[None, :]
    y = jnp.where(z > 0.0, z, jnp.expm1(z)) + (1.0 + EPSILON)
    return jnp.diag(jnp.squeeze(y))


if __name__ == "__main__":
    input_dim = 32
    hidden_size = 128
    output_dim = 8

    key = jax.random.PRNGKey(0)
    kx, kw1, kb1, kw2, kb2 = jax.random.split(key, 5)

    # Deterministic synthetic params (PyTorch Linear init ~ U(-1/sqrt(fan_in), 1/sqrt(fan_in)))
    x = jax.random.normal(kx, (1, input_dim), dtype=jnp.float32)
    lim1 = float(input_dim) ** -0.5
    lim2 = float(hidden_size) ** -0.5
    w1 = jax.random.uniform(kw1, (input_dim, hidden_size), jnp.float32, -lim1, lim1)
    b1 = jax.random.uniform(kb1, (hidden_size,), jnp.float32, -lim1, lim1)
    w2 = jax.random.uniform(kw2, (hidden_size, output_dim), jnp.float32, -lim2, lim2)
    b2 = jax.random.uniform(kb2, (output_dim,), jnp.float32, -lim2, lim2)

    # One-time packing (outside the per-call forward path).
    packed = jax.block_until_ready(pack_f_cov_params(w1, b1, w2, b2))

    out = jax.block_until_ready(
        f_cov_forward(x, packed, d_in=input_dim, hidden=hidden_size, d_out=output_dim))

    ref = reference_forward(x, w1, b1, w2, b2)
    assert out.shape == (output_dim, output_dim)
    assert jnp.allclose(out, ref, atol=1e-5, rtol=1e-5), "mismatch vs reference"

    print("KERNEL_OK")
</pallas_src>

<mosaic_0001>
module attributes {stable_mosaic.version = 11 : i64} {
  func.func @f_cov_kernel(%arg0: memref<1x32xf32, #tpu.memory_space<vmem>>, %arg1: memref<168x128xf32, #tpu.memory_space<vmem>>, %arg2: memref<1x128xf32, #tpu.memory_space<vmem>>) attributes {dimension_semantics = [], scalar_prefetch = 0 : i64, scratch_operands = 0 : i64, tpu.core_type = #tpu.core_type<tc>} {
    %c0 = arith.constant 0 : index
    %c0_0 = arith.constant 0 : index
    %0 = vector.load %arg1[%c0, %c0_0] : memref<168x128xf32, #tpu.memory_space<vmem>>, vector<32x128xf32>
    %c32 = arith.constant 32 : index
    %c0_1 = arith.constant 0 : index
    %1 = vector.load %arg1[%c32, %c0_1] : memref<168x128xf32, #tpu.memory_space<vmem>>, vector<128x128xf32>
    %c160 = arith.constant 160 : index
    %c0_2 = arith.constant 0 : index
    %2 = vector.load %arg1[%c160, %c0_2] : memref<168x128xf32, #tpu.memory_space<vmem>>, vector<1x128xf32>
    %c161 = arith.constant 161 : index
    %c0_3 = arith.constant 0 : index
    %3 = vector.load %arg1[%c161, %c0_3] : memref<168x128xf32, #tpu.memory_space<vmem>>, vector<1x128xf32>
    %c0_4 = arith.constant 0 : index
    %c0_5 = arith.constant 0 : index
    %4 = vector.load %arg0[%c0_4, %c0_5] : memref<1x32xf32, #tpu.memory_space<vmem>>, vector<1x32xf32>
    %cst = arith.constant dense<0.000000e+00> : vector<1x128xf32>
    %5 = tpu.matmul %4, %0, %cst {dimension_numbers = #tpu.dot_dimension_numbers<[1], [0], [0], [1], [0, 0, 1, 1], [], []>} : vector<1x32xf32>, vector<32x128xf32>, vector<1x128xf32> -> vector<1x128xf32>
    %6 = arith.addf %5, %2 : vector<1x128xf32>
    %cst_6 = arith.constant 0.000000e+00 : f32
    %7 = vector.broadcast %cst_6 : f32 to vector<1x128xf32>
    %8 = arith.maximumf %6, %7 : vector<1x128xf32>
    %cst_7 = arith.constant dense<0.000000e+00> : vector<1x128xf32>
    %9 = tpu.matmul %8, %1, %cst_7 {dimension_numbers = #tpu.dot_dimension_numbers<[1], [0], [0], [1], [0, 0, 1, 1], [], []>} : vector<1x128xf32>, vector<128x128xf32>, vector<1x128xf32> -> vector<1x128xf32>
    %10 = arith.addf %9, %3 : vector<1x128xf32>
    %cst_8 = arith.constant 0.000000e+00 : f32
    %11 = vector.broadcast %cst_8 : f32 to vector<1x128xf32>
    %12 = arith.cmpf ogt, %10, %11 : vector<1x128xf32>
    %cst_9 = arith.constant 1.000000e+00 : f32
    %13 = vector.broadcast %cst_9 : f32 to vector<1x128xf32>
    %14 = arith.addf %10, %13 : vector<1x128xf32>
    %15 = math.exp %10 : vector<1x128xf32>
    %cst_10 = arith.constant 9.99999982E-15 : f32
    %16 = vector.broadcast %cst_10 : f32 to vector<1x128xf32>
    %17 = arith.addf %15, %16 : vector<1x128xf32>
    %18 = arith.select %12, %14, %17 : vector<1x128xi1>, vector<1x128xf32>
    %c0_11 = arith.constant 0 : index
    %c0_12 = arith.constant 0 : index
    %19 = vector.load %arg2[%c0_11, %c0_12] : memref<1x128xf32, #tpu.memory_space<vmem>>, vector<1x128xf32>
    tpu.vector_store %arg2[%c0_11, %c0_12], %18 {strides = array<i32>} : memref<1x128xf32, #tpu.memory_space<vmem>>, vector<1x128xf32>,
    return
  }
}

</mosaic_0001>

<bundles_post_ra>
// kernel: f_cov_forward.1
= control target key start
LH: loop header
LB: loop body
LE: loop exit
PB: predicated region body
PF: predicated region fallthrough
CT: control target
= control target key end

     0   :  { %7 = vsyncpa [#allocation3], 0  ;;  %s209_s0 = inlined_call_operand.hbm [shape: f32[1,32], index: 0, kind: input, shape index: {}]   ;;  %s210_s1 = inlined_call_operand.hbm [shape: f32[168,128], index: 1, kind: input, shape index: {}]   ;;  %s211_s2 = inlined_call_operand.vmem [shape: f32[1,128], index: 2, kind: output, shape index: {}]  }
   0x1   :  { %s14_s11 = sshll.u32 %s209_s0, 4  ;;  %s15_s11 = int_to_ptr.hbm [resolvable:$true] %s14_s11 }
   0x2   :  { %8 = vsyncpa [#allocation5], 0  ;;  %s181_s12 = smov [#allocation2]   ;;  %s24_s16 = sshll.u32 %s210_s1, 4  ;;  %s25_s16 = int_to_ptr.hbm [resolvable:$true] %s24_s16 }
   0x3   :  { %s16_s13 = sshll.u32 %s181_s12, 4  ;;  %s182_s17 = smov [#allocation4]   ;;  %s17_s13 = int_to_ptr.vmem [resolvable:$true] %s16_s13 }
   0x4   :  { %19 = dma.hbm_to_vmem [thread:$0]  %s15_s11, 16, %s17_s13, [#allocation3]  }
   0x5   :  { %s26_s18 = sshll.u32 %s182_s17, 4  ;;  %s183_s19 = smov 128   ;;  %s27_s18 = int_to_ptr.vmem [resolvable:$true] %s26_s18 }
   0x6   :  { %s184_s20 = smov 8  }
   0x7   :  { %32 = dma.hbm_to_vmem [thread:$0]  %s25_s16, 2688, %s27_s18, [#allocation5], %s183_s19, %s183_s19, %s184_s20  }
   0x8   :  { %177 = dma.done.wait [#allocation3], 16  }
   0x9   :  { %178 = vsyncadd [#allocation3], 4294967280 }
   0xa   :  { %179 = dma.done.wait [#allocation5], 2688  }
   0xb   :  { %180 = vsyncadd [#allocation5], 4294964608  ;;  %v44_v0 = vld [vmem:[#allocation4 + $0x18] sm:$0xff]  ;;  %v43_v1 = vld [vmem:[#allocation4 + $0x10] sm:$0xff]  ;;  %vm64_vm0 = vcmask 261120  }
   0xc   :  { %80 = vmatpush.msra.mxu0 %v44_v0  ;;  %v60_v2 = vld [vmem:[#allocation4 + $0x98] sm:$0xff]  ;;  %v42_v3 = vld [vmem:[#allocation4 + $0x8] sm:$0xff]  ;;  %v59_v4 = vld [vmem:[#allocation4 + $0x90] sm:$0xff] }
   0xd   :  { %89 = vmatpush.msra.mxu1 %v60_v2  ;;  %v58_v5 = vld [vmem:[#allocation4 + $0x88] sm:$0xff]  ;;  %v41_v6 = vld [vmem:[#allocation4] sm:$0xff]  ;;  %v63_v7 = vld [vmem:[#allocation2] sm:$0x1] }
   0xe   :  { %81 = vmatpush.msra.mxu0 %v43_v1  ;;  %v57_v8 = vld [vmem:[#allocation4 + $0x80] sm:$0xff]  ;;  %v56_v9 = vld [vmem:[#allocation4 + $0x78] sm:$0xff]  ;;  %v55_v10 = vld [vmem:[#allocation4 + $0x70] sm:$0xff] }
   0xf   :  { %90 = vmatpush.msra.mxu1 %v59_v4  ;;  %v54_v11 = vld [vmem:[#allocation4 + $0x68] sm:$0xff]  ;;  %v53_v12 = vld [vmem:[#allocation4 + $0x60] sm:$0xff]  ;;  %v52_v13 = vld [vmem:[#allocation4 + $0x58] sm:$0xff] }
  0x10   :  { %82 = vmatpush.msra.mxu0 %v42_v3  ;;  %v51_v14 = vld [vmem:[#allocation4 + $0x50] sm:$0xff]  ;;  %v50_v15 = vld [vmem:[#allocation4 + $0x48] sm:$0xff]  ;;  %v49_v16 = vld [vmem:[#allocation4 + $0x40] sm:$0xff] }
  0x11   :  { %91 = vmatpush.msra.mxu1 %v58_v5  ;;  %v48_v17 = vld [vmem:[#allocation4 + $0x38] sm:$0xff]  ;;  %v47_v18 = vld [vmem:[#allocation4 + $0x30] sm:$0xff]  ;;  %v46_v19 = vld [vmem:[#allocation4 + $0x28] sm:$0xff] }
  0x12   :  { %83 = vmatpush.msra.mxu0 %v41_v6  ;;  %v45_v20 = vld [vmem:[#allocation4 + $0x20] sm:$0xff] }
  0x13   :  { %122 = vmatmul.msk.f32.vlgmr.msra.gmra.mxu0 %vm64_vm0, %v63_v7  ;;  %92 = vmatpush.msra.mxu1 %v57_v8  ;;  %v61_v21 = vld [vmem:[#allocation4 + $0xa0] sm:$0x1]  ;;  %v62_v25 = vld [vmem:[#allocation4 + $0xa1] sm:$0x1] }
  0x15   :  { %93 = vmatpush.msra.mxu1 %v56_v9 }
  0x17   :  { %94 = vmatpush.msra.mxu1 %v55_v10 }
  0x19   :  { %95 = vmatpush.msra.mxu1 %v54_v11 }
  0x1b   :  { %96 = vmatpush.msra.mxu1 %v53_v12 }
  0x1d   :  { %97 = vmatpush.msra.mxu1 %v52_v13 }
  0x1f   :  { %98 = vmatpush.msra.mxu1 %v51_v14 }
  0x21   :  { %99 = vmatpush.msra.mxu1 %v50_v15 }
  0x23   :  { %100 = vmatpush.msra.mxu1 %v49_v16 }
  0x25   :  { %101 = vmatpush.msra.mxu1 %v48_v17 }
  0x27   :  { %102 = vmatpush.msra.mxu1 %v47_v18 }
  0x29   :  { %103 = vmatpush.msra.mxu1 %v46_v19 }
  0x2b   :  { %104 = vmatpush.msra.mxu1 %v45_v20 }
  0x90   :  { %v85_v22 = vpop.f32.mrf.mxu0 }
  0x91   :  { %v86_v23 = vadd.f32 %v85_v22, %v61_v21 }
  0x93   :  { %v88_v24 = vmax.f32 %v86_v23, 0.0 }
  0x95   :  { %105 = vmatmul.f32.vlgmr.msra.gmra.mxu1 %v88_v24 }
 0x112   :  { %v106_v26 = vpop.f32.mrf.mxu1 }
 0x113   :  { %v107_v27 = vadd.f32 %v106_v26, %v62_v25 }
 0x115   :  { %v111_v28 = vmul.f32 1.442695, %v107_v27  ;;  %v110_v30 = vadd.f32 1.0, %v107_v27  ;;  %vm109_vm1 = vcmp.gt.f32.partialorder %v107_v27, 0.0 }
 0x117   :  { %127 = vpow2.f32 %v111_v28 }
 0x11d   :  { %v128_v29 = vpop.eup %127 }
 0x11e   :  { %v113_v31 = vadd.f32 1e-14, %v128_v29 }
 0x120   :  { %v114_v32 = vsel %vm109_vm1, %v110_v30, %v113_v31 }
 0x121   :  { %115 = vst [vmem:[%s211_s2] sm:$0x1] %v114_v32 }
 0x122   :  { %120 = vsyncpa [#allocation3], 1 }
 0x123   :  { %121 = vsyncpa [#allocation5], 1 }

</bundles_post_ra>
